<compile_context>
chip_gen: v7x
topology: tpu7x:2x2x1
jax: 0.10.0
libtpu: 0.0.40
codegen_flags: <defaults>
</compile_context>

<pallas_src>
import jax
import jax.numpy as jnp
from jax.experimental import pallas as pl
from jax.experimental.pallas import tpu as pltpu


def _round_up(x, m):
    return (x + m - 1) // m * m


# ----------------------------------------------------------------------------
# Hardware query / tile planning
# ----------------------------------------------------------------------------

def _tpu_config():
    """Returns (generation tag, TensorCores per chip, VMEM capacity bytes)."""
    kind = ""
    try:
        kind = jax.devices()[0].device_kind.lower()
    except Exception:
        pass
    if "v7" in kind:
        gen, n_tc, default_cap = "v7x", 2, 64 * 2**20
    elif "v6" in kind:
        gen, n_tc, default_cap = "v6e", 1, 128 * 2**20
    elif "v5e" in kind or "v5 lite" in kind or "v5lite" in kind:
        gen, n_tc, default_cap = "v5e", 1, 128 * 2**20
    else:
        gen, n_tc, default_cap = "unknown", 1, 64 * 2**20
    cap = default_cap
    try:
        info_cap = int(pltpu.get_tpu_info().vmem_capacity_bytes)
        if info_cap >= 16 * 2**20:
            cap = info_cap
    except Exception:
        pass  # fall back to the device_kind-based estimate
    return gen, n_tc, cap


def _residency_bytes(tm, nk, dp):
    """VMEM residency of the kernel's buffers (BlockSpecs are double-buffered)."""
    tk = dp // nk
    return (2 * tk * dp * 2      # weight block : 2 buffers, bf16
            + 2 * 8 * dp * 4     # bias block   : 2 buffers, f32, padded to 8 sublanes
            + 2 * tm * dp * 2    # input block  : 2 buffers, bf16
            + 2 * tm * dp * 4    # output block : 2 buffers, f32
            + tm * dp * 2)       # running activation: 1 bf16 scratch


def _plan_tiles(m, dp, *, gen, n_tc, vmem_cap):
    """Choose the row tile TM and K-split n_k from per-generation rooflines and
    the VMEM residency model."""
    # Arithmetic intensity ~ TM flops per weight byte:
    #   v6e needs ~650-700 rows (918 TF/s / ~1.4 TB/s) -> TM ~1024;
    #   v5e needs ~240 rows, v7x (per TC) ~300 rows    -> TM ~512 is plenty.
    tm_target = {"v5e": 512, "v6e": 1024, "v7x": 512}.get(gen, 512)
    tm = min(tm_target, _round_up(m, 8))
    # v7x megacore: the "parallel" M axis must span >= n_tc tiles or a core idles.
    if n_tc >= 2 and m >= 512:
        tm = min(tm, _round_up(pl.cdiv(m, n_tc), 8))

    q = dp // 128
    nk_options = [d for d in range(1, q + 1) if q % d == 0]  # keep TK a 128-multiple
    budget = int(vmem_cap * 0.80)  # ~20% headroom for compiler scratch / semaphores

    nk = nk_options[0]
    while _residency_bytes(tm, nk, dp) > budget:
        w_bytes = 2 * (dp // nk) * dp * 2
        act_bytes = 14 * tm * dp
        larger = [d for d in nk_options if d > nk]
        if larger and (w_bytes >= act_bytes or tm <= 64):
            nk = larger[0]                      # split K: weight double-buffer dominates
        elif tm > 8:
            tm = max(8, _round_up(tm // 2, 8))  # shrink the row tile
        elif larger:
            nk = larger[0]
        else:
            break
    return tm, nk


# ----------------------------------------------------------------------------
# Kernel
# ----------------------------------------------------------------------------

def _make_kernel(n_l, n_k, tk):
    """Grid: (M tiles, layers, K chunks); layers/K are the sequential chain.

    x_ref: (TM, Dp)      bf16  input activations for this M tile (resident over l,k)
    w_ref: (TK, Dp)      bf16  K-chunk of this layer's weight, laid out (in, out)
    b_ref: (1, Dp)       f32   this layer's bias
    o_ref: (TM, Dp)      f32   K-split accumulator / final output (resident over l,k)
    h_ref: (n_k, TM, TK) bf16  running activation, chunked along K
    """

    def kernel(x_ref, w_ref, b_ref, o_ref, h_ref):
        l = pl.program_id(1)
        k = pl.program_id(2)

        @pl.when(jnp.logical_and(l == 0, k == 0))
        def _():
            # First layer: seed the bf16 running activation from the input tile.
            for kk in range(n_k):
                h_ref[kk] = x_ref[:, kk * tk:(kk + 1) * tk]

        lhs = h_ref[0] if n_k == 1 else h_ref[k]
        part = jnp.dot(lhs, w_ref[...], preferred_element_type=jnp.float32)

        if n_k == 1:
            # Common case: no per-layer f32 store/reload — activation stays in
            # the bf16 scratch; the f32 output block is written once per M tile.
            acc = part + b_ref[...]

            @pl.when(l < n_l - 1)
            def _():
                h_ref[0] = acc.astype(jnp.bfloat16)

            @pl.when(l == n_l - 1)
            def _():
                o_ref[...] = acc
        else:
            # K-split path: accumulate partial products in the resident f32
            # output block; re-chunk into the bf16 scratch at the last K step.
            @pl.when(k == 0)
            def _():
                o_ref[...] = part + b_ref[...]

            @pl.when(k > 0)
            def _():
                o_ref[...] = o_ref[...] + part

            @pl.when(jnp.logical_and(k == n_k - 1, l < n_l - 1))
            def _():
                acc = o_ref[...]
                for kk in range(n_k):
                    h_ref[kk] = acc[:, kk * tk:(kk + 1) * tk].astype(jnp.bfloat16)

    return kernel


# ----------------------------------------------------------------------------
# Host-side wrappers
# ----------------------------------------------------------------------------

def prepare_mlp_params(weights, biases):
    """Pad to lane width and cast to the kernel's storage dtypes ONCE.

    weights: (L, dim, dim) f32, stored (in, out).  biases: (L, dim) f32.
    Returns (w_p bf16 (L, Dp, Dp), b_p f32 (L, 1, Dp), dim).
    """
    n_layers, d_in, d_out = weights.shape
    assert d_in == d_out
    dp = _round_up(d_in, 128)
    w_p = jnp.pad(weights, ((0, 0), (0, dp - d_in), (0, dp - d_out))).astype(jnp.bfloat16)
    b_p = jnp.pad(biases, ((0, 0), (0, dp - d_out))).reshape(n_layers, 1, dp).astype(jnp.float32)
    return w_p, b_p, d_in


def mlp_forward(x, w_p, b_p, dim, *, force_nk=None):
    """x: (batch, seq, dim). w_p/b_p: from prepare_mlp_params.
    force_nk: testing/tuning override for the K-split (must divide Dp/128)."""
    batch, seq, d = x.shape
    assert d == dim
    n_layers, dp, _ = w_p.shape

    m = batch * seq
    gen, n_tc, vmem_cap = _tpu_config()
    tm, n_k = _plan_tiles(m, dp, gen=gen, n_tc=n_tc, vmem_cap=vmem_cap)
    if force_nk is not None:
        assert (dp // 128) % force_nk == 0, "force_nk must keep TK a multiple of 128"
        n_k = force_nk
    tk = dp // n_k

    mp = _round_up(m, tm)
    n_m = mp // tm

    x2d = x.reshape(m, dim).astype(jnp.float32)
    x_p = jnp.pad(x2d, ((0, mp - m), (0, dp - dim))).astype(jnp.bfloat16)

    need = _residency_bytes(tm, n_k, dp)
    vmem_limit = int(min(int(vmem_cap * 0.85),
                         max(int(need * 1.4), 32 * 2**20, need + (2 << 20))))

    kernel = _make_kernel(n_l=n_layers, n_k=n_k, tk=tk)

    out_p = pl.pallas_call(
        kernel,
        out_shape=jax.ShapeDtypeStruct((mp, dp), jnp.float32),
        grid_spec=pltpu.PrefetchScalarGridSpec(
            num_scalar_prefetch=0,
            grid=(n_m, n_layers, n_k),
            in_specs=[
                # Activations: one block per M tile, constant across l and k.
                pl.BlockSpec((tm, dp), lambda i, l, k: (i, 0)),
                # Per-layer, per-K-chunk weight (leading layer axis squeezed out).
                pl.BlockSpec((None, tk, dp), lambda i, l, k: (l, k, 0)),
                # Per-layer bias.
                pl.BlockSpec((None, 1, dp), lambda i, l, k: (l, 0, 0)),
            ],
            out_specs=pl.BlockSpec((tm, dp), lambda i, l, k: (i, 0)),
            scratch_shapes=[pltpu.VMEM((n_k, tm, tk), jnp.bfloat16)],
        ),
        compiler_params=pltpu.CompilerParams(
            dimension_semantics=("parallel", "arbitrary", "arbitrary"),
            vmem_limit_bytes=vmem_limit,
        ),
    )(x_p, w_p, b_p)

    return out_p[:m, :dim].reshape(batch, seq, dim).astype(x.dtype)


# ----------------------------------------------------------------------------
# Parameter init and references
# ----------------------------------------------------------------------------

def init_params(key, dim, layers):
    """torch.nn.Linear-style init: weight (out, in), bias (out,). Stored transposed (in, out)."""
    ws, bs = [], []
    bound = 1.0 / jnp.sqrt(dim)
    for i in range(layers):
        kw, kb, key = jax.random.split(jax.random.fold_in(key, i), 3)
        w = jax.random.uniform(kw, (dim, dim), jnp.float32, -bound, bound)  # (out, in)
        b = jax.random.uniform(kb, (dim,), jnp.float32, -bound, bound)
        ws.append(w.T)  # (in, out)
        bs.append(b)
    return jnp.stack(ws), jnp.stack(bs)


def mlp_reference_bf16(x, weights, biases):
    """Pure-JAX reference using the same numerical recipe (bf16 matmul, f32 accum/bias)."""
    batch, seq, dim = x.shape
    h = x.reshape(-1, dim).astype(jnp.float32)
    for l in range(weights.shape[0]):
        h = (
            jnp.dot(
                h.astype(jnp.bfloat16),
                weights[l].astype(jnp.bfloat16),
                preferred_element_type=jnp.float32,
            )
            + biases[l]
        )
    return h.reshape(batch, seq, dim)


def mlp_reference_f32(x, weights, biases):
    """Full-precision reference (chained torch.nn.Linear semantics)."""
    batch, seq, dim = x.shape
    h = x.reshape(-1, dim)
    for l in range(weights.shape[0]):
        h = h @ weights[l] + biases[l]
    return h.reshape(batch, seq, dim)


if __name__ == "__main__":
    key = jax.random.PRNGKey(0)
    batch, seq = 2, 8

    # --- Test 1: benchmark-scale MLP (dim=32, 3 layers), n_k == 1 path -------
    dim, layers = 32, 3
    kx, kp = jax.random.split(key)
    x = jax.random.normal(kx, (batch, seq, dim), jnp.float32)
    weights, biases = init_params(kp, dim, layers)
    w_p, b_p, _ = prepare_mlp_params(weights, biases)   # pad/cast hoisted, done once

    out = jax.block_until_ready(mlp_forward(x, w_p, b_p, dim))
    assert out.shape == (batch, seq, dim)
    assert jnp.allclose(out, mlp_reference_bf16(x, weights, biases), atol=1e-3, rtol=1e-3), \
        "mismatch vs bf16-recipe reference"
    assert jnp.allclose(out, mlp_reference_f32(x, weights, biases), atol=5e-2, rtol=5e-2), \
        "mismatch vs f32 reference"

    # --- Test 2: exercise the K-split path (large-Dp / v7x VMEM fallback) ----
    dim2, layers2 = 256, 3
    kx2, kp2 = jax.random.split(jax.random.fold_in(key, 1))
    x2 = jax.random.normal(kx2, (batch, seq, dim2), jnp.float32)
    w2, b2 = init_params(kp2, dim2, layers2)
    w2_p, b2_p, _ = prepare_mlp_params(w2, b2)

    out2 = jax.block_until_ready(mlp_forward(x2, w2_p, b2_p, dim2, force_nk=2))
    assert out2.shape == (batch, seq, dim2)
    assert jnp.allclose(out2, mlp_reference_bf16(x2, w2, b2), atol=2e-3, rtol=2e-3), \
        "K-split mismatch vs bf16-recipe reference"
    assert jnp.allclose(out2, mlp_reference_f32(x2, w2, b2), atol=5e-2, rtol=5e-2), \
        "K-split mismatch vs f32 reference"

    print("KERNEL_OK")
</pallas_src>

<mosaic_0001>
module attributes {stable_mosaic.version = 11 : i64} {
  func.func @kernel(%arg0: i32, %arg1: i32, %arg2: i32, %arg3: memref<16x128xbf16, #tpu.memory_space<vmem>>, %arg4: memref<1x128x128xbf16, #tpu.memory_space<vmem>>, %arg5: memref<1x1x128xf32, #tpu.memory_space<vmem>>, %arg6: memref<16x128xf32, #tpu.memory_space<vmem>>, %arg7: memref<1x16x128xbf16, #tpu.memory_space<vmem>>) attributes {dimension_semantics = [#tpu.dimension_semantics<parallel>, #tpu.dimension_semantics<arbitrary>, #tpu.dimension_semantics<arbitrary>], iteration_bounds = array<i64: 1, 3, 1>, scalar_prefetch = 0 : i64, scratch_operands = 1 : i64, tpu.core_type = #tpu.core_type<tc>, window_params = [{transform_indices = @transform_0, window_bounds = array<i64: 16, 128>}, {transform_indices = @transform_1, window_bounds = array<i64: 1, 128, 128>}, {transform_indices = @transform_2, window_bounds = array<i64: 1, 1, 128>}, {transform_indices = @transform_3, window_bounds = array<i64: 16, 128>}]} {
    %c0_i32 = arith.constant 0 : i32
    %0 = arith.cmpi eq, %arg1, %c0_i32 : i32
    %c0_i32_0 = arith.constant 0 : i32
    %1 = arith.cmpi eq, %arg2, %c0_i32_0 : i32
    %2 = arith.andi %0, %1 : i1
    %3 = arith.extui %2 : i1 to i32
    %c0_i32_1 = arith.constant 0 : i32
    %4 = arith.cmpi ne, %3, %c0_i32_1 : i32
    scf.if %4 {
      %c0_13 = arith.constant 0 : index
      %c0_14 = arith.constant 0 : index
      %20 = vector.load %arg3[%c0_13, %c0_14] : memref<16x128xbf16, #tpu.memory_space<vmem>>, vector<16x128xbf16>
      %c0_15 = arith.constant 0 : index
      %c0_16 = arith.constant 0 : index
      %c0_17 = arith.constant 0 : index
      %21 = vector.load %arg7[%c0_15, %c0_16, %c0_17] : memref<1x16x128xbf16, #tpu.memory_space<vmem>>, vector<1x16x128xbf16>
      %22 = vector.shape_cast %21 : vector<1x16x128xbf16> to vector<16x128xbf16>
      %23 = vector.shape_cast %20 : vector<16x128xbf16> to vector<1x16x128xbf16>
      tpu.vector_store %arg7[%c0_15, %c0_16, %c0_17], %23 {strides = array<i32>} : memref<1x16x128xbf16, #tpu.memory_space<vmem>>, vector<1x16x128xbf16>,
    } else {
    }
    %c0 = arith.constant 0 : index
    %c0_2 = arith.constant 0 : index
    %c0_3 = arith.constant 0 : index
    %5 = vector.load %arg7[%c0, %c0_2, %c0_3] : memref<1x16x128xbf16, #tpu.memory_space<vmem>>, vector<1x16x128xbf16>
    %6 = vector.shape_cast %5 : vector<1x16x128xbf16> to vector<16x128xbf16>
    %c0_4 = arith.constant 0 : index
    %c0_5 = arith.constant 0 : index
    %c0_6 = arith.constant 0 : index
    %7 = vector.load %arg4[%c0_4, %c0_5, %c0_6] : memref<1x128x128xbf16, #tpu.memory_space<vmem>>, vector<1x128x128xbf16>
    %8 = vector.shape_cast %7 : vector<1x128x128xbf16> to vector<128x128xbf16>
    %cst = arith.constant dense<0.000000e+00> : vector<16x128xf32>
    %9 = tpu.matmul %6, %8, %cst {dimension_numbers = #tpu.dot_dimension_numbers<[1], [0], [0], [1], [0, 0, 1, 1], [], []>} : vector<16x128xbf16>, vector<128x128xbf16>, vector<16x128xf32> -> vector<16x128xf32>
    %c0_7 = arith.constant 0 : index
    %c0_8 = arith.constant 0 : index
    %c0_9 = arith.constant 0 : index
    %10 = vector.load %arg5[%c0_7, %c0_8, %c0_9] : memref<1x1x128xf32, #tpu.memory_space<vmem>>, vector<1x1x128xf32>
    %11 = vector.shape_cast %10 : vector<1x1x128xf32> to vector<1x128xf32>
    %12 = vector.broadcast %11 : vector<1x128xf32> to vector<16x128xf32>
    %13 = arith.addf %9, %12 : vector<16x128xf32>
    %c2_i32 = arith.constant 2 : i32
    %14 = arith.cmpi slt, %arg1, %c2_i32 : i32
    %15 = arith.extui %14 : i1 to i32
    %c0_i32_10 = arith.constant 0 : i32
    %16 = arith.cmpi ne, %15, %c0_i32_10 : i32
    scf.if %16 {
      %20 = arith.truncf %13 : vector<16x128xf32> to vector<16x128xbf16>
      %c0_13 = arith.constant 0 : index
      %c0_14 = arith.constant 0 : index
      %c0_15 = arith.constant 0 : index
      %21 = vector.load %arg7[%c0_13, %c0_14, %c0_15] : memref<1x16x128xbf16, #tpu.memory_space<vmem>>, vector<1x16x128xbf16>
      %22 = vector.shape_cast %21 : vector<1x16x128xbf16> to vector<16x128xbf16>
      %23 = vector.shape_cast %20 : vector<16x128xbf16> to vector<1x16x128xbf16>
      tpu.vector_store %arg7[%c0_13, %c0_14, %c0_15], %23 {strides = array<i32>} : memref<1x16x128xbf16, #tpu.memory_space<vmem>>, vector<1x16x128xbf16>,
    } else {
    }
    %c2_i32_11 = arith.constant 2 : i32
    %17 = arith.cmpi eq, %arg1, %c2_i32_11 : i32
    %18 = arith.extui %17 : i1 to i32
    %c0_i32_12 = arith.constant 0 : i32
    %19 = arith.cmpi ne, %18, %c0_i32_12 : i32
    scf.if %19 {
      %c0_13 = arith.constant 0 : index
      %c0_14 = arith.constant 0 : index
      %20 = vector.load %arg6[%c0_13, %c0_14] : memref<16x128xf32, #tpu.memory_space<vmem>>, vector<16x128xf32>
      tpu.vector_store %arg6[%c0_13, %c0_14], %13 {strides = array<i32>} : memref<16x128xf32, #tpu.memory_space<vmem>>, vector<16x128xf32>,
    } else {
    }
    return
  }
  func.func @transform_0(%arg0: i32, %arg1: i32, %arg2: i32) -> (i32, i32) {
    %c0_i32 = arith.constant 0 : i32
    %c0_i32_0 = arith.constant 0 : i32
    return %arg0, %c0_i32 : i32, i32
  }
  func.func @transform_1(%arg0: i32, %arg1: i32, %arg2: i32) -> (i32, i32, i32) {
    %c0_i32 = arith.constant 0 : i32
    %c0_i32_0 = arith.constant 0 : i32
    return %arg1, %arg2, %c0_i32 : i32, i32, i32
  }
  func.func @transform_2(%arg0: i32, %arg1: i32, %arg2: i32) -> (i32, i32, i32) {
    %c0_i32 = arith.constant 0 : i32
    %c0_i32_0 = arith.constant 0 : i32
    %c0_i32_1 = arith.constant 0 : i32
    return %arg1, %c0_i32, %c0_i32_0 : i32, i32, i32
  }
  func.func @transform_3(%arg0: i32, %arg1: i32, %arg2: i32) -> (i32, i32) {
    %c0_i32 = arith.constant 0 : i32
    %c0_i32_0 = arith.constant 0 : i32
    return %arg0, %c0_i32 : i32, i32
  }
}

</mosaic_0001>

<bundles_post_ra>
// kernel: tpu_custom_call.1
= control target key start
LH: loop header
LB: loop body
LE: loop exit
PB: predicated region body
PF: predicated region fallthrough
CT: control target
= control target key end

     0   :  { %8 = vsyncpa [#allocation4], 0  ;;  %s1022_s0 = inlined_call_operand.hbm [shape: bf16[16,128], index: 0, kind: input, shape index: {}]   ;;  %s1023_s1 = inlined_call_operand.hbm [shape: bf16[3,128,128], index: 1, kind: input, shape index: {}]   ;;  %s1024_s2 = inlined_call_operand.vmem [shape: f32[3,1,128], index: 2, kind: input, shape index: {}]   ;;  %s1025_s3 = inlined_call_operand.hbm [shape: f32[16,128], index: 3, kind: output, shape index: {}]  }
   0x1   :  { %9 = vsyncpa [#allocation7], 0 }
   0x2   :  { %11 = vsyncpa [#allocation7 + $0x1], 0 }
   0x3   :  { %12 = vsyncpa [#allocation5], 0  ;;  %s807_s12 = smov 0   ;;  %s809_s13 = smov 0  }
   0x4   :  { %s811_s14 = smov 0   ;;  %s813_s15 = smov 0  }
   0x5   :  { %s815_s16 = smov 0   ;;  %s817_s17 = smov 0  }
   0x6 LB: > { %s488_s18 = sadd.s32 4294967295, %s776_s17   ;;  %p85_p0 = scmp.ne.s32.totalorder %s760_s13, %s756_s12  ;;  %s776_s17 = sphi %s817_s17, %s18_s17   ;;  %s772_s16 = sphi %s815_s16, %s1043_s16   ;;  %s768_s15 = sphi %s813_s15, %s1042_s15   ;;  %s764_s14 = sphi %s811_s14, %s1041_s14   ;;  %s760_s13 = sphi %s809_s13, %s1040_s13   ;;  %s756_s12 = sphi %s807_s12, %s1039_s12  }
   0x7   : > { %p839_p1 = scmp.eq.s32.totalorder %s488_s18, 0  ;;  %p489_p2 = scmp.ge.s32.totalorder %s776_s17, 1 }
   0x8   : > { %p148_p3 = scmp.lt.s32.totalorder %s776_s17, 4  ;;  %s778_s22 = smov [#allocation3]  }
   0x9   : > { %s1030_s19 = scalar_select %p839_p1, 1, 0 }
   0xa   : > { %p847_p4 = por %p839_p1, %p85_p0  ;;  %p851_p5 = pnand %p489_p2, %p148_p3 }
   0xb   : > { %s163_s23 = sshll.u32 %s778_s22, 4  ;;  %s33_s25 = sadd.s32 1, %s772_s16  ;;  %s164_s23 = int_to_ptr.vmem [resolvable:$true] %s163_s23 }
   0xc   : > { %s1031_s20 = scalar_select %p847_p4, 1, 0 }
   0xd   : > { %s1032_s21 = scalar_select %p851_p5, 1, 0 }
   0xe   : > { %p556_p6 = pneg %p851_p5  ;;  %s634_s28 = scalar_lea.hbm %s1022_s0, 128 }
   0xf   : > { %p635_p8 = scmp.ne.s32.totalorder %s1022_s0, %s634_s28  ;;  %p641_p12 = scmp.lt.u32.totalorder %s634_s28, %s1022_s0 }
  0x10   : > { %p859_p7 = pnand %p556_p6, %p839_p1 }
  0x12   : > { %p636_p9 = pneg %p859_p7 }
  0x14   : > { %p637_p10 = pnand %p636_p9, %p635_p8 }
  0x16   : > { %p638_p11 = pneg %p637_p10 }
  0x18   : > { %p643_p13 = pnand %p641_p12, %p638_p11 }
  0x1a   : > { %646 = shalt.err (!%p643_p13)
}
  0x1b   : > { %s647_s6 = scalar_lea.vmem %s164_s23, 128  ;;  %p655_p6 = scmp.lt.s32.totalorder %s164_s23, %s164_s23 }
  0x1c   : > { %p648_p0 = scmp.ne.s32.totalorder %s164_s23, %s647_s6  ;;  %p656_p4 = scmp.lt.s32.totalorder %s647_s6, %s647_s6 }
  0x1e   : > { %p650_p2 = pnand %p648_p0, %p636_p9  ;;  %p657_p1 = por %p656_p4, %p655_p6 }
  0x20   : > { %p651_p3 = pneg %p650_p2 }
  0x22   : > { %p658_p5 = pnand %p657_p1, %p651_p3 }
  0x24   : > { %661 = shalt.err (!%p658_p5)
}
  0x25   : > { %s779_s7 = smov 64   ;;  %s780_s8 = smov 4  }
  0x26   : > { %559 = dma.hbm_to_vmem [thread:$0]  (!%p859_p7), %s1022_s0, 128, %s164_s23, [#allocation4], %s779_s7, %s779_s7, %s780_s8  }
  0x27   : > { %p35_p1 = scmp.ge.s32.totalorder %s33_s25, 3  ;;  %s72_s11 = sadd.s32 1, %s764_s14 }
  0x28   : > { %p79_p4 = scmp.ne.s32.totalorder %s764_s14, %s760_s13  ;;  %p80_p5 = scmp.eq.s32.totalorder %s776_s17, 0 }
  0x29   : > { %s1045_s25 = smov (%p35_p1, %s33_s25), 0  ;;  %p565_p9 = scmp.lt.s32.totalorder %s776_s17, 3 }
  0x2a   : > { %p81_p8 = por %p80_p5, %p79_p4  ;;  %s67_s12 = ssub.s32 %s772_s16, %s1045_s25 }
  0x2b   : > { %s177_s22 = sand.u32 1, %s764_s14   ;;  %p70_p10 = scmp.eq.s32.totalorder %s67_s12, 0 }
  0x2c   : > { %s492_s24 = sshll.u32 %s177_s22, 6  ;;  %s515_s26 = sshll.u32 %s772_s16, 10 }
  0x2d   : > { %s895_s27 = scalar_select %p70_p10, %s764_s14, %s72_s11  }
  0x2e   : > { %s900_s23 = scalar_lea.hbm %s1023_s1, %s515_s26  ;;  %s181_s30 = scalar_lea.vmem [#allocation6], %s492_s24 }
  0x2f   : > { %s190_s4 = sshll.u32 %s181_s30, 4  ;;  %p902_p7 = pnand %p565_p9, %p81_p8  ;;  %s906_s4 = int_to_ptr.vmem [resolvable:$true] %s190_s4 }
  0x30   : > { %s908_s6 = scalar_lea.sflag [#allocation7], %s177_s22  ;;  %s662_s9 = scalar_lea.hbm %s900_s23, 1024 }
  0x31   : > { %p663_p11 = scmp.ne.s32.totalorder %s900_s23, %s662_s9  ;;  %p664_p12 = pneg %p902_p7 }
  0x32   : > { %s667_s12 = scalar_lea.hbm %s1023_s1, 3072  ;;  %p668_p2 = scmp.lt.u32.totalorder %s900_s23, %s1023_s1 }
  0x33   : > { %p665_p13 = pnand %p664_p12, %p663_p11  ;;  %p669_p3 = scmp.lt.u32.totalorder %s667_s12, %s662_s9 }
  0x34   : > { %p671_p1 = scmp.lt.u32.totalorder %s662_s9, %s900_s23 }
  0x35   : > { %p666_p0 = pneg %p665_p13  ;;  %p670_p6 = por %p669_p3, %p668_p2 }
  0x37   : > { %p672_p4 = por %p671_p1, %p670_p6 }
  0x39   : > { %p673_p5 = pnand %p672_p4, %p666_p0 }
  0x3b   : > { %676 = shalt.err (!%p673_p5)
}
  0x3c   : > { %s677_s22 = scalar_lea.vmem %s906_s4, 1024  ;;  %s781_s28 = smov [#allocation6]  }
  0x3d   : > { %p678_p8 = scmp.ne.s32.totalorder %s906_s4, %s677_s22  ;;  %s682_s29 = sshll.u32 %s781_s28, 4  ;;  %s683_s29 = int_to_ptr.vmem [resolvable:$false] %s682_s29 }
  0x3e   : > { %s684_s30 = scalar_lea.vmem %s683_s29, 2048  ;;  %p685_p11 = scmp.lt.s32.totalorder %s906_s4, %s683_s29 }
  0x3f   : > { %p680_p9 = pnand %p678_p8, %p664_p12  ;;  %p686_p13 = scmp.lt.s32.totalorder %s684_s30, %s677_s22 }
  0x41   : > { %p681_p10 = pneg %p680_p9  ;;  %p687_p2 = por %p686_p13, %p685_p11 }
  0x43   : > { %p688_p3 = pnand %p687_p2, %p681_p10 }
  0x45   : > { %691 = shalt.err (!%p688_p3)
}
  0x46   : > { %563 = dma.hbm_to_vmem [thread:$0]  (!%p902_p7), %s900_s23, 1024, %s906_s4, %s908_s6, %s779_s7, %s779_s7, %s780_s8  }
  0x47   : > { %p1035_p12 = scmp.ne.s32.totalorder %s1032_s21, 0 }
  0x48   : > { %p1036_p0 = scmp.ne.s32.totalorder (!%p1035_p12), %s1030_s19, 0 }
  0x49   : > { %208 = sbr.rel (%p1035_p12) target bundleno = 382 (0x17e), region = 32 }
  0x50   : > { %743 = dma.done.wait (%p1036_p0), [#allocation4], 128  }
  0x51   : > { %745 = vsyncadd (%p1036_p0), [#allocation4], 4294967168  ;;  %s214_s9 = sand.u32 1, %s760_s13   ;;  %p1037_p6 = scmp.ne.s32.totalorder %s1031_s20, 0 }
  0x52   : > { %s497_s5 = sshll.u32 %s214_s9, 6  ;;  %s215_s10 = scalar_lea.sflag [#allocation7], %s214_s9 }
  0x53   : > { %s946_s11 = scalar_lea.vmem [#allocation6], %s497_s5 }
  0x54   : > { %747 = dma.done.wait (%p1037_p6), %s215_s10, 1024  }
  0x55   : > { %749 = vsyncadd (%p1037_p6), %s215_s10, 4294966272  ;;  %p241_p7 = scmp.lt.s32.totalorder %s768_s15, 2  ;;  %p246_p1 = scmp.eq.s32.totalorder %s768_s15, 0 }
  0x56   : > { %v625_v0 = vld [vmem:[#allocation3] sm:$0xff] (%p246_p1)  }
  0x57   : > { %s955_s21 = scalar_select %p241_p7, %s768_s15, 2 }
  0x58   : > { %251 = sbr.rel (!%p246_p1) target bundleno = 95 (0x5f), region = 44  ;;  %260 = vst [vmem:[#allocation2] sm:$0xff] (%p246_p1), %v625_v0 }
  0x59   : > { %s243_s8 = scalar_lea.vmem %s1024_s2, %s955_s21 }
  0x5f PF: > { %v626_v1 = vld [vmem:[%s946_s11] sm:$0xff]   ;;  %v782_v2 = vmov 0.0   ;;  %v627_v3 = vld [vmem:[%s946_s11 + $0x8] sm:$0xff]   ;;  %vm783_vm0 = vmmov 0   ;;  %v628_v4 = vld [vmem:[%s946_s11 + $0x10] sm:$0xff]   ;;  %p509_p4 = scmp.ge.s32.totalorder %s768_s15, 2 }
  0x60   : > { %526 = vmatprep.subr.bf16.mxu0 %v782_v2  ;;  %542 = vmatprep.mubr.msk.bf16.mxu0 %vm783_vm0, %v782_v2  ;;  %v629_v5 = vld [vmem:[%s946_s11 + $0x18] sm:$0xff]   ;;  %v630_v6 = vld [vmem:[%s946_s11 + $0x20] sm:$0xff]   ;;  %v631_v7 = vld [vmem:[%s946_s11 + $0x28] sm:$0xff]  }
  0x61   : > { %527 = vmatpush3.bf16.msra.mxu0 %v626_v1  ;;  %v632_v8 = vld [vmem:[%s946_s11 + $0x30] sm:$0xff]   ;;  %v633_v9 = vld [vmem:[%s946_s11 + $0x38] sm:$0xff]  }
  0x62   : > { %528 = vmatprep.subr.bf16.mxu0 %v782_v2  ;;  %v261_v10 = vld [vmem:[#allocation2] sm:$0xff] }
  0x63   : > { %v500_v11 = vld [vmem:[%s243_s8] ss:$0 sm:$0xff] }
  0x65   : > { %529 = vmatpush3.bf16.msra.mxu0 %v627_v3 }
  0x66   : > { %530 = vmatprep.subr.bf16.mxu0 %v782_v2 }
  0x69   : > { %531 = vmatpush3.bf16.msra.mxu0 %v628_v4 }
  0x6a   : > { %532 = vmatprep.subr.bf16.mxu0 %v782_v2 }
  0x6d   : > { %533 = vmatpush3.bf16.msra.mxu0 %v629_v5 }
  0x6e   : > { %534 = vmatprep.subr.bf16.mxu0 %v782_v2 }
  0x71   : > { %535 = vmatpush3.bf16.msra.mxu0 %v630_v6 }
  0x72   : > { %536 = vmatprep.subr.bf16.mxu0 %v782_v2 }
  0x75   : > { %537 = vmatpush3.bf16.msra.mxu0 %v631_v7 }
  0x76   : > { %538 = vmatprep.subr.bf16.mxu0 %v782_v2 }
  0x79   : > { %539 = vmatpush3.bf16.msra.mxu0 %v632_v8 }
  0x7a   : > { %540 = vmatprep.subr.bf16.mxu0 %v782_v2 }
  0x7d   : > { %541 = vmatpush3.bf16.msra.mxu0 %v633_v9 }
  0x80   : > { %543 = vmatmul.mubr.bf16.vlgmr.msra.gmra.mrb[0].mxu0 %v261_v10 }
 0x150   : > { %377 = sbr.rel (%p509_p4) target bundleno = 347 (0x15b), region = 48 }
 0x153   : > { %v367_v12 = vpop.f32.mrb[0].mxu0 }
 0x154   : > { %v368_v13 = vadd.f32 %v500_v11, %v367_v12  ;;  %v544_v14 = vpop.f32.mrb[1].mxu0 }
 0x155   : > { %v370_v15 = vpop.f32.mrb[2].mxu0 }
 0x156   : > { %v371_v16 = vadd.f32 %v500_v11, %v370_v15  ;;  %v545_v17 = vpop.f32.mrb[3].mxu0 }
 0x158   : > { %v378_v18 = vpack.c.bf16 %v371_v16, %v368_v13 }
 0x15a   : > { %379 = vst [vmem:[#allocation2] sm:$0xff] %v378_v18 }
 0x15b PF: > { %p510_p5 = scmp.ne.s32.totalorder %s768_s15, 2 }
 0x15c   : > { %384 = vst [vmem:[#allocation8] sm:$0xff] (!%p510_p5), %v368_v13  ;;  %385 = vst [vmem:[#allocation8 + $0x8] sm:$0xff] (!%p510_p5), %v371_v16 }
 0x15d   : > { %383 = sbr.rel (%p510_p5) target bundleno = 356 (0x164), region = 52 }
 0x164 PF: > { %p978_p8 = scmp.eq.s32.totalorder %s488_s18, 2  ;;  %s784_s6 = smov [#allocation8]  }
 0x165   : > { %s395_s12 = sshll.u32 %s784_s6, 4  ;;  %s396_s12 = int_to_ptr.vmem [resolvable:$true] %s395_s12 }
 0x166   : > { %s692_s24 = scalar_lea.vmem %s396_s12, 256  ;;  %p699_p13 = scmp.lt.s32.totalorder %s396_s12, %s396_s12 }
 0x167   : > { %p693_p9 = scmp.ne.s32.totalorder %s396_s12, %s692_s24  ;;  %p700_p2 = scmp.lt.s32.totalorder %s692_s24, %s692_s24 }
 0x169   : > { %p694_p10 = pnand %p693_p9, %p978_p8  ;;  %p701_p3 = por %p700_p2, %p699_p13 }
 0x16b   : > { %p695_p11 = pneg %p694_p10 }
 0x16d   : > { %p702_p12 = pnand %p701_p3, %p695_p11 }
 0x16f   : > { %705 = shalt.err (!%p702_p12)
}
 0x170   : > { %s706_s18 = scalar_lea.hbm %s1025_s3, 256 }
 0x171   : > { %p707_p0 = scmp.ne.s32.totalorder %s1025_s3, %s706_s18  ;;  %p712_p1 = scmp.lt.u32.totalorder %s706_s18, %s1025_s3 }
 0x173   : > { %p708_p6 = pnand %p707_p0, %p978_p8 }
 0x175   : > { %p709_p7 = pneg %p708_p6 }
 0x177   : > { %p714_p4 = pnand %p712_p1, %p709_p7 }
 0x179   : > { %717 = shalt.err (!%p714_p4)
}
 0x17a   : > { %s785_s9 = smov 128   ;;  %s786_s5 = smov 8  }
 0x17b   : > { %553 = dma.vmem_to_hbm [thread:$0]  (%p978_p8), %s396_s12, 256, %s1025_s3, [#allocation5], %s785_s9, %s785_s9, %s786_s5  }
 0x17c   : > { %751 = dma.done.wait (%p978_p8), [#allocation5], 256  }
 0x17d   : > { %753 = vsyncadd (%p978_p8), [#allocation5], 4294967040 }
 0x17e PF: > { %s18_s17 = sadd.s32 1, %s776_s17   ;;  %s1039_s12 = smov %s760_s13 }
 0x17f   : > { %p15_p5 = scmp.ge.s32.totalorder %s18_s17, 5   ;;  %s1040_s13 = smov %s764_s14 }
 0x180   : > { %s1041_s14 = smov %s895_s27  ;;  %s1042_s15 = smov %s772_s16 }
 0x181   : > { %s1043_s16 = smov %s1045_s25  ;;  %17 = sbr.rel (!%p15_p5) target bundleno = 6 (0x6), region = 91 }
 0x188   :  { %411 = vsyncpa [#allocation4], 1 }
 0x189   :  { %413 = vsyncpa [#allocation4 + $0x1], 1 }
 0x18a   :  { %414 = vsyncpa [#allocation7], 1 }
 0x18b   :  { %416 = vsyncpa [#allocation7 + $0x1], 1 }
 0x18c   :  { %417 = vsyncpa [#allocation5], 1 }
 0x18d   :  { %419 = vsyncpa [#allocation5 + $0x1], 1 }

</bundles_post_ra>
